<compile_context>
chip_gen: v7x
topology: tpu7x:2x2x1
jax: 0.10.0
libtpu: 0.0.40
codegen_flags: <defaults>
</compile_context>

<pallas_src>
import functools
import math

import jax
import jax.numpy as jnp
from jax.experimental import pallas as pl
from jax.experimental.pallas import tpu as pltpu


def _gelu_tanh(x):
    # TODO(synk): torch nn.GELU() defaults to the exact erf form; the tanh
    # approximation is used here (Mosaic-safe, max abs diff ~1e-3).
    c = math.sqrt(2.0 / math.pi)
    return 0.5 * x * (1.0 + jnp.tanh(c * (x + 0.044715 * x * x * x)))


def _layer_norm(t, gamma, beta, eps):
    mu = jnp.mean(t, axis=-1, keepdims=True)
    var = jnp.mean(jnp.square(t - mu), axis=-1, keepdims=True)
    return (t - mu) * jax.lax.rsqrt(var + eps) * gamma + beta


def _vit_block_kernel(x_ref, wq_ref, bq_ref, wk_ref, bk_ref, wv_ref, bv_ref,
                      wproj_ref, bproj_ref, g1_ref, b1_ref,
                      wfc1_ref, bfc1_ref, wfc2_ref, bfc2_ref, g2_ref, b2_ref,
                      out_ref, attn_ref, acc_ref, *, eps):
    """One grid step = one (batch element, head).

    x_ref:     (N, C)      tokens of this batch element (resident across heads)
    wq/wk/wv:  (1, C, d)   this head's projection weight (scale folded into q)
    bq/bk/bv:  (1, 1, d)   this head's projection bias  (scale folded into q)
    wproj_ref: (1, d, C)   this head's rows of the output projection
    bproj/g/b: (1, C)      proj bias, norm1/norm2 gamma+beta (constant blocks)
    wfc1_ref:  (C, Hd)     mlp.fc1 weight (pre-transposed, constant block)
    wfc2_ref:  (Hd, C)     mlp.fc2 weight (pre-transposed, constant block)
    out_ref:   (N, C)      block output rows for this batch element
    attn_ref:  (1,1,N,N)   softmaxed attention weights for this (b, head)
    acc_ref:   (N, C) f32  VMEM accumulator for y = sum_h o_h @ w_proj[h]
    """
    gemm_dtype = wq_ref.dtype
    h = pl.program_id(1)

    @pl.when(h == 0)
    def _():
        acc_ref[...] = jnp.zeros_like(acc_ref)

    xb = x_ref[...]                                            # (N, C)

    # Per-head q/k/v projections: full-block 2-D MXU matmuls, zero relayouts.
    q = (jnp.dot(xb, wq_ref[0], preferred_element_type=jnp.float32)
         + bq_ref[0]).astype(gemm_dtype)                       # (N, d)
    k = (jnp.dot(xb, wk_ref[0], preferred_element_type=jnp.float32)
         + bk_ref[0]).astype(gemm_dtype)
    v = (jnp.dot(xb, wv_ref[0], preferred_element_type=jnp.float32)
         + bv_ref[0]).astype(gemm_dtype)

    # scores = q @ k^T (scale already folded into wq/bq); contraction on the
    # last dim of both operands avoids an explicit transpose (MXU trans_b).
    s = jax.lax.dot_general(q, k, (((1,), (1,)), ((), ())),
                            preferred_element_type=jnp.float32)  # (N, N)
    s = s - jnp.max(s, axis=-1, keepdims=True)
    e = jnp.exp(s)
    # Exact softmax normalization: these weights are exported to the caller.
    p = e / jnp.sum(e, axis=-1, keepdims=True)
    attn_ref[...] = p.reshape((1, 1) + p.shape)

    o = jnp.dot(p.astype(gemm_dtype), v,
                preferred_element_type=jnp.float32)            # (N, d)

    # Fold the output projection into the head reduction:
    #   y = sum_h  o_h @ w_proj[h*d:(h+1)*d, :]
    acc_ref[...] += jnp.dot(o.astype(gemm_dtype), wproj_ref[0],
                            preferred_element_type=jnp.float32)

    @pl.when(h == pl.num_programs(1) - 1)
    def _():
        y = acc_ref[...] + bproj_ref[...]                      # (N, C) f32
        # x1 = y + norm1(y)   (expert wrapper: residual of the attention OUTPUT)
        x1 = y + _layer_norm(y, g1_ref[...], b1_ref[...], eps)
        h1 = jnp.dot(x1.astype(gemm_dtype), wfc1_ref[...],
                     preferred_element_type=jnp.float32) + bfc1_ref[...]
        a = _gelu_tanh(h1)
        m = jnp.dot(a.astype(gemm_dtype), wfc2_ref[...],
                    preferred_element_type=jnp.float32) + bfc2_ref[...]
        # out = x1 + norm2(mlp(x1))
        out_ref[...] = (x1 + _layer_norm(m, g2_ref[...], b2_ref[...], eps)
                        ).astype(out_ref.dtype)


def expert_timm_vit_block(x, params, *, num_heads, eps=1e-6,
                          gemm_dtype=jnp.bfloat16):
    """Pallas wrapper.

    x: (B, N, C) f32.  `params` holds pre-transposed Linear weights (x @ W + b).
    Returns (out (B, N, C) f32, attn (B, H, N, N) f32).

    gemm_dtype (default bfloat16) is the MXU operand dtype; accumulation,
    softmax and LayerNorm remain f32.  Pass jnp.float32 for tight checks.
    """
    B, N, C = x.shape
    H = num_heads
    d = C // H
    hidden = params['w_fc1'].shape[1]
    scale = float(d) ** -0.5

    def head_major_cols(w):                       # (C, C) -> (H, C, d)
        return jnp.transpose(w.reshape(C, H, d), (1, 0, 2))

    w_qkv, b_qkv = params['w_qkv'], params['b_qkv']
    # Fold the attention scale into the q projection (zero in-kernel cost).
    wq = head_major_cols(w_qkv[:, :C] * scale).astype(gemm_dtype)
    wk = head_major_cols(w_qkv[:, C:2 * C]).astype(gemm_dtype)
    wv = head_major_cols(w_qkv[:, 2 * C:]).astype(gemm_dtype)
    bq = (b_qkv[:C] * scale).reshape(H, 1, d).astype(jnp.float32)
    bk = b_qkv[C:2 * C].reshape(H, 1, d).astype(jnp.float32)
    bv = b_qkv[2 * C:].reshape(H, 1, d).astype(jnp.float32)
    wproj = params['w_proj'].reshape(H, d, C).astype(gemm_dtype)  # head-major rows

    args = (
        x.reshape(B * N, C).astype(gemm_dtype),
        wq, bq, wk, bk, wv, bv, wproj,
        params['b_proj'].reshape(1, C).astype(jnp.float32),
        params['gamma1'].reshape(1, C).astype(jnp.float32),
        params['beta1'].reshape(1, C).astype(jnp.float32),
        params['w_fc1'].astype(gemm_dtype),
        params['b_fc1'].reshape(1, hidden).astype(jnp.float32),
        params['w_fc2'].astype(gemm_dtype),
        params['b_fc2'].reshape(1, C).astype(jnp.float32),
        params['gamma2'].reshape(1, C).astype(jnp.float32),
        params['beta2'].reshape(1, C).astype(jnp.float32),
    )

    def const_spec(shape):
        # Full-array block, DMA'd once, VMEM-resident (constant index_map).
        return pl.BlockSpec(shape, lambda b, h: (0,) * len(shape))

    def head_spec(shape):
        # First axis selects the head; last two dims equal the full array dims.
        return pl.BlockSpec((1,) + tuple(shape[1:]),
                            lambda b, h: (h,) + (0,) * (len(shape) - 1))

    row_spec = pl.BlockSpec((N, C), lambda b, h: (b, 0))   # per-batch token rows

    in_specs = [
        row_spec,                                          # x  (resident over h)
        head_spec(wq.shape), head_spec(bq.shape),
        head_spec(wk.shape), head_spec(bk.shape),
        head_spec(wv.shape), head_spec(bv.shape),
        head_spec(wproj.shape),
        const_spec((1, C)),                                # b_proj
        const_spec((1, C)), const_spec((1, C)),            # gamma1, beta1
        const_spec((C, hidden)), const_spec((1, hidden)),  # fc1
        const_spec((hidden, C)), const_spec((1, C)),       # fc2
        const_spec((1, C)), const_spec((1, C)),            # gamma2, beta2
    ]

    out_shape = (jax.ShapeDtypeStruct((B * N, C), jnp.float32),
                 jax.ShapeDtypeStruct((B, H, N, N), jnp.float32))
    out_specs = (row_spec,
                 pl.BlockSpec((1, 1, N, N), lambda b, h: (b, h, 0, 0)))

    out2d, attn = pl.pallas_call(
        functools.partial(_vit_block_kernel, eps=eps),
        out_shape=out_shape,
        grid=(B, H),                      # batch parallel, heads = reduction
        in_specs=in_specs,
        out_specs=out_specs,
        scratch_shapes=[pltpu.VMEM((N, C), jnp.float32)],
        compiler_params=pltpu.CompilerParams(
            dimension_semantics=("parallel", "arbitrary")),
    )(*args)

    return out2d.reshape(B, N, C), attn


def _reference_block(x, params, num_heads, eps=1e-6):
    """Pure-jnp reference mirroring the PyTorch module forward exactly
    (exact softmax division; same tanh GELU as the kernel)."""
    B, N, C = x.shape
    d = C // num_heads
    scale = float(d) ** -0.5
    qkv = x @ params['w_qkv'] + params['b_qkv']                 # (B, N, 3C)
    qkv = qkv.reshape(B, N, 3, num_heads, d).transpose(2, 0, 3, 1, 4)
    q, k, v = qkv[0], qkv[1], qkv[2]
    attn = jnp.einsum('bhnd,bhmd->bhnm', q, k) * scale
    attn = jax.nn.softmax(attn, axis=-1)
    o = jnp.einsum('bhnm,bhmd->bhnd', attn, v)
    o = o.transpose(0, 2, 1, 3).reshape(B, N, C)
    y = o @ params['w_proj'] + params['b_proj']                 # attn output

    def ln(t, g, b):
        mu = t.mean(-1, keepdims=True)
        var = ((t - mu) ** 2).mean(-1, keepdims=True)
        return (t - mu) / jnp.sqrt(var + eps) * g + b

    x1 = y + ln(y, params['gamma1'], params['beta1'])
    h = _gelu_tanh(x1 @ params['w_fc1'] + params['b_fc1'])
    m = h @ params['w_fc2'] + params['b_fc2']
    out = x1 + ln(m, params['gamma2'], params['beta2'])
    return out, attn


if __name__ == "__main__":
    # Small shapes consistent with the module: B=2, N=8 tokens, C=32 channels,
    # 4 heads (head_dim=8), mlp hidden = 4*C = 128.
    B, N, C, H = 2, 8, 32, 4
    hidden = 4 * C

    key = jax.random.PRNGKey(0)
    ks = jax.random.split(key, 12)

    def lin_w(k, fan_in, shape):
        return jax.random.normal(k, shape, jnp.float32) * (1.0 / fan_in ** 0.5)

    x = jax.random.normal(ks[0], (B, N, C), dtype=jnp.float32)
    params = dict(
        w_qkv=lin_w(ks[1], C, (C, 3 * C)),
        b_qkv=jax.random.normal(ks[2], (3 * C,), jnp.float32) * 0.02,
        w_proj=lin_w(ks[3], C, (C, C)),
        b_proj=jax.random.normal(ks[4], (C,), jnp.float32) * 0.02,
        gamma1=1.0 + 0.1 * jax.random.normal(ks[5], (C,), jnp.float32),
        beta1=0.05 * jax.random.normal(ks[6], (C,), jnp.float32),
        w_fc1=lin_w(ks[7], C, (C, hidden)),
        b_fc1=jax.random.normal(ks[8], (hidden,), jnp.float32) * 0.02,
        w_fc2=lin_w(ks[9], hidden, (hidden, C)),
        b_fc2=jax.random.normal(ks[10], (C,), jnp.float32) * 0.02,
        gamma2=1.0 + 0.1 * jax.random.normal(ks[11], (C,), jnp.float32),
        beta2=jnp.zeros((C,), jnp.float32),
    )

    out_gold, attn_gold = _reference_block(x, params, H)

    # f32 MXU operands: tight structural check.
    out32, attn32 = expert_timm_vit_block(x, params, num_heads=H,
                                          gemm_dtype=jnp.float32)
    jax.block_until_ready((out32, attn32))
    assert out32.shape == (B, N, C) and attn32.shape == (B, H, N, N)
    assert jnp.allclose(attn32, attn_gold, atol=1e-2, rtol=1e-2), "attn mismatch (f32)"
    assert jnp.allclose(out32, out_gold, atol=2e-2, rtol=2e-2), "output mismatch (f32)"

    # Default path: bf16 MXU operands (f32 accumulation / softmax / LayerNorm).
    out_bf, attn_bf = expert_timm_vit_block(x, params, num_heads=H)
    jax.block_until_ready((out_bf, attn_bf))
    assert out_bf.shape == (B, N, C) and attn_bf.shape == (B, H, N, N)
    assert jnp.allclose(attn_bf, attn_gold, atol=5e-2, rtol=5e-2), "attn mismatch (bf16)"
    assert jnp.allclose(out_bf, out_gold, atol=1e-1, rtol=5e-2), "output mismatch (bf16)"

    print("KERNEL_OK")
</pallas_src>

<mosaic_0001>
module attributes {stable_mosaic.version = 11 : i64} {
  func.func @_vit_block_kernel(%arg0: i32, %arg1: i32, %arg2: memref<8x32xf32, #tpu.memory_space<vmem>>, %arg3: memref<1x32x8xf32, #tpu.memory_space<vmem>>, %arg4: memref<1x1x8xf32, #tpu.memory_space<vmem>>, %arg5: memref<1x32x8xf32, #tpu.memory_space<vmem>>, %arg6: memref<1x1x8xf32, #tpu.memory_space<vmem>>, %arg7: memref<1x32x8xf32, #tpu.memory_space<vmem>>, %arg8: memref<1x1x8xf32, #tpu.memory_space<vmem>>, %arg9: memref<1x8x32xf32, #tpu.memory_space<vmem>>, %arg10: memref<1x32xf32, #tpu.memory_space<vmem>>, %arg11: memref<1x32xf32, #tpu.memory_space<vmem>>, %arg12: memref<1x32xf32, #tpu.memory_space<vmem>>, %arg13: memref<32x128xf32, #tpu.memory_space<vmem>>, %arg14: memref<1x128xf32, #tpu.memory_space<vmem>>, %arg15: memref<128x32xf32, #tpu.memory_space<vmem>>, %arg16: memref<1x32xf32, #tpu.memory_space<vmem>>, %arg17: memref<1x32xf32, #tpu.memory_space<vmem>>, %arg18: memref<1x32xf32, #tpu.memory_space<vmem>>, %arg19: memref<8x32xf32, #tpu.memory_space<vmem>>, %arg20: memref<1x1x8x8xf32, #tpu.memory_space<vmem>>, %arg21: memref<8x32xf32, #tpu.memory_space<vmem>>) attributes {dimension_semantics = [#tpu.dimension_semantics<parallel>, #tpu.dimension_semantics<arbitrary>], iteration_bounds = array<i64: 2, 4>, scalar_prefetch = 0 : i64, scratch_operands = 1 : i64, tpu.core_type = #tpu.core_type<tc>, window_params = [{transform_indices = @transform_0, window_bounds = array<i64: 8, 32>}, {transform_indices = @transform_1, window_bounds = array<i64: 1, 32, 8>}, {transform_indices = @transform_2, window_bounds = array<i64: 1, 1, 8>}, {transform_indices = @transform_3, window_bounds = array<i64: 1, 32, 8>}, {transform_indices = @transform_4, window_bounds = array<i64: 1, 1, 8>}, {transform_indices = @transform_5, window_bounds = array<i64: 1, 32, 8>}, {transform_indices = @transform_6, window_bounds = array<i64: 1, 1, 8>}, {transform_indices = @transform_7, window_bounds = array<i64: 1, 8, 32>}, {pipeline_mode = #tpu.pipeline_mode<synchronous>, transform_indices = @transform_8, window_bounds = array<i64: 1, 32>}, {pipeline_mode = #tpu.pipeline_mode<synchronous>, transform_indices = @transform_9, window_bounds = array<i64: 1, 32>}, {pipeline_mode = #tpu.pipeline_mode<synchronous>, transform_indices = @transform_10, window_bounds = array<i64: 1, 32>}, {pipeline_mode = #tpu.pipeline_mode<synchronous>, transform_indices = @transform_11, window_bounds = array<i64: 32, 128>}, {pipeline_mode = #tpu.pipeline_mode<synchronous>, transform_indices = @transform_12, window_bounds = array<i64: 1, 128>}, {pipeline_mode = #tpu.pipeline_mode<synchronous>, transform_indices = @transform_13, window_bounds = array<i64: 128, 32>}, {pipeline_mode = #tpu.pipeline_mode<synchronous>, transform_indices = @transform_14, window_bounds = array<i64: 1, 32>}, {pipeline_mode = #tpu.pipeline_mode<synchronous>, transform_indices = @transform_15, window_bounds = array<i64: 1, 32>}, {pipeline_mode = #tpu.pipeline_mode<synchronous>, transform_indices = @transform_16, window_bounds = array<i64: 1, 32>}, {transform_indices = @transform_17, window_bounds = array<i64: 8, 32>}, {transform_indices = @transform_18, window_bounds = array<i64: 1, 1, 8, 8>}]} {
    %c0_i32 = arith.constant 0 : i32
    %0 = arith.cmpi eq, %arg1, %c0_i32 : i32
    %1 = arith.extui %0 : i1 to i32
    %c0_i32_0 = arith.constant 0 : i32
    %2 = arith.cmpi ne, %1, %c0_i32_0 : i32
    scf.if %2 {
      %cst_39 = arith.constant 0.000000e+00 : f32
      %47 = vector.broadcast %cst_39 : f32 to vector<8x32xf32>
      %c0_40 = arith.constant 0 : index
      %c0_41 = arith.constant 0 : index
      %48 = vector.load %arg21[%c0_40, %c0_41] : memref<8x32xf32, #tpu.memory_space<vmem>>, vector<8x32xf32>
      tpu.vector_store %arg21[%c0_40, %c0_41], %47 {strides = array<i32>} : memref<8x32xf32, #tpu.memory_space<vmem>>, vector<8x32xf32>,
    } else {
    }
    %c0 = arith.constant 0 : index
    %c0_1 = arith.constant 0 : index
    %3 = vector.load %arg2[%c0, %c0_1] : memref<8x32xf32, #tpu.memory_space<vmem>>, vector<8x32xf32>
    %c0_2 = arith.constant 0 : index
    %c0_3 = arith.constant 0 : index
    %c0_4 = arith.constant 0 : index
    %4 = vector.load %arg3[%c0_2, %c0_3, %c0_4] : memref<1x32x8xf32, #tpu.memory_space<vmem>>, vector<1x32x8xf32>
    %5 = vector.shape_cast %4 : vector<1x32x8xf32> to vector<32x8xf32>
    %cst = arith.constant dense<0.000000e+00> : vector<8x8xf32>
    %6 = tpu.matmul %3, %5, %cst {dimension_numbers = #tpu.dot_dimension_numbers<[1], [0], [0], [1], [0, 0, 1, 1], [], []>} : vector<8x32xf32>, vector<32x8xf32>, vector<8x8xf32> -> vector<8x8xf32>
    %c0_5 = arith.constant 0 : index
    %c0_6 = arith.constant 0 : index
    %c0_7 = arith.constant 0 : index
    %7 = vector.load %arg4[%c0_5, %c0_6, %c0_7] : memref<1x1x8xf32, #tpu.memory_space<vmem>>, vector<1x1x8xf32>
    %8 = vector.shape_cast %7 : vector<1x1x8xf32> to vector<1x8xf32>
    %9 = vector.broadcast %8 : vector<1x8xf32> to vector<8x8xf32>
    %10 = arith.addf %6, %9 : vector<8x8xf32>
    %c0_8 = arith.constant 0 : index
    %c0_9 = arith.constant 0 : index
    %c0_10 = arith.constant 0 : index
    %11 = vector.load %arg5[%c0_8, %c0_9, %c0_10] : memref<1x32x8xf32, #tpu.memory_space<vmem>>, vector<1x32x8xf32>
    %12 = vector.shape_cast %11 : vector<1x32x8xf32> to vector<32x8xf32>
    %cst_11 = arith.constant dense<0.000000e+00> : vector<8x8xf32>
    %13 = tpu.matmul %3, %12, %cst_11 {dimension_numbers = #tpu.dot_dimension_numbers<[1], [0], [0], [1], [0, 0, 1, 1], [], []>} : vector<8x32xf32>, vector<32x8xf32>, vector<8x8xf32> -> vector<8x8xf32>
    %c0_12 = arith.constant 0 : index
    %c0_13 = arith.constant 0 : index
    %c0_14 = arith.constant 0 : index
    %14 = vector.load %arg6[%c0_12, %c0_13, %c0_14] : memref<1x1x8xf32, #tpu.memory_space<vmem>>, vector<1x1x8xf32>
    %15 = vector.shape_cast %14 : vector<1x1x8xf32> to vector<1x8xf32>
    %16 = vector.broadcast %15 : vector<1x8xf32> to vector<8x8xf32>
    %17 = arith.addf %13, %16 : vector<8x8xf32>
    %c0_15 = arith.constant 0 : index
    %c0_16 = arith.constant 0 : index
    %c0_17 = arith.constant 0 : index
    %18 = vector.load %arg7[%c0_15, %c0_16, %c0_17] : memref<1x32x8xf32, #tpu.memory_space<vmem>>, vector<1x32x8xf32>
    %19 = vector.shape_cast %18 : vector<1x32x8xf32> to vector<32x8xf32>
    %cst_18 = arith.constant dense<0.000000e+00> : vector<8x8xf32>
    %20 = tpu.matmul %3, %19, %cst_18 {dimension_numbers = #tpu.dot_dimension_numbers<[1], [0], [0], [1], [0, 0, 1, 1], [], []>} : vector<8x32xf32>, vector<32x8xf32>, vector<8x8xf32> -> vector<8x8xf32>
    %c0_19 = arith.constant 0 : index
    %c0_20 = arith.constant 0 : index
    %c0_21 = arith.constant 0 : index
    %21 = vector.load %arg8[%c0_19, %c0_20, %c0_21] : memref<1x1x8xf32, #tpu.memory_space<vmem>>, vector<1x1x8xf32>
    %22 = vector.shape_cast %21 : vector<1x1x8xf32> to vector<1x8xf32>
    %23 = vector.broadcast %22 : vector<1x8xf32> to vector<8x8xf32>
    %24 = arith.addf %20, %23 : vector<8x8xf32>
    %cst_22 = arith.constant dense<0.000000e+00> : vector<8x8xf32>
    %25 = tpu.matmul %10, %17, %cst_22 {dimension_numbers = #tpu.dot_dimension_numbers<[1], [1], [0], [0], [0, 0, 1, 0], [], []>} : vector<8x8xf32>, vector<8x8xf32>, vector<8x8xf32> -> vector<8x8xf32>
    %cst_23 = arith.constant dense<0xFF800000> : vector<8xf32>
    %26 = vector.multi_reduction <maximumf>, %25, %cst_23 [1] : vector<8x8xf32> to vector<8xf32>
    %27 = vector.shape_cast %26 : vector<8xf32> to vector<8x1xf32>
    %28 = vector.broadcast %27 : vector<8x1xf32> to vector<8x8xf32>
    %29 = arith.subf %25, %28 : vector<8x8xf32>
    %30 = math.exp %29 : vector<8x8xf32>
    %cst_24 = arith.constant dense<0.000000e+00> : vector<8xf32>
    %31 = vector.multi_reduction <add>, %30, %cst_24 [1] : vector<8x8xf32> to vector<8xf32>
    %32 = vector.shape_cast %31 : vector<8xf32> to vector<8x1xf32>
    %33 = vector.broadcast %32 : vector<8x1xf32> to vector<8x8xf32>
    %34 = arith.divf %30, %33 : vector<8x8xf32>
    %35 = vector.shape_cast %34 : vector<8x8xf32> to vector<1x1x8x8xf32>
    %c0_25 = arith.constant 0 : index
    %c0_26 = arith.constant 0 : index
    %c0_27 = arith.constant 0 : index
    %c0_28 = arith.constant 0 : index
    %36 = vector.load %arg20[%c0_25, %c0_26, %c0_27, %c0_28] : memref<1x1x8x8xf32, #tpu.memory_space<vmem>>, vector<1x1x8x8xf32>
    tpu.vector_store %arg20[%c0_25, %c0_26, %c0_27, %c0_28], %35 {strides = array<i32>} : memref<1x1x8x8xf32, #tpu.memory_space<vmem>>, vector<1x1x8x8xf32>,
    %cst_29 = arith.constant dense<0.000000e+00> : vector<8x8xf32>
    %37 = tpu.matmul %34, %24, %cst_29 {dimension_numbers = #tpu.dot_dimension_numbers<[1], [0], [0], [1], [0, 0, 1, 1], [], []>} : vector<8x8xf32>, vector<8x8xf32>, vector<8x8xf32> -> vector<8x8xf32>
    %c0_30 = arith.constant 0 : index
    %c0_31 = arith.constant 0 : index
    %38 = vector.load %arg21[%c0_30, %c0_31] : memref<8x32xf32, #tpu.memory_space<vmem>>, vector<8x32xf32>
    %c0_32 = arith.constant 0 : index
    %c0_33 = arith.constant 0 : index
    %c0_34 = arith.constant 0 : index
    %39 = vector.load %arg9[%c0_32, %c0_33, %c0_34] : memref<1x8x32xf32, #tpu.memory_space<vmem>>, vector<1x8x32xf32>
    %40 = vector.shape_cast %39 : vector<1x8x32xf32> to vector<8x32xf32>
    %cst_35 = arith.constant dense<0.000000e+00> : vector<8x32xf32>
    %41 = tpu.matmul %37, %40, %cst_35 {dimension_numbers = #tpu.dot_dimension_numbers<[1], [0], [0], [1], [0, 0, 1, 1], [], []>} : vector<8x8xf32>, vector<8x32xf32>, vector<8x32xf32> -> vector<8x32xf32>
    %42 = arith.addf %38, %41 : vector<8x32xf32>
    %c0_36 = arith.constant 0 : index
    %c0_37 = arith.constant 0 : index
    %43 = vector.load %arg21[%c0_36, %c0_37] : memref<8x32xf32, #tpu.memory_space<vmem>>, vector<8x32xf32>
    tpu.vector_store %arg21[%c0_36, %c0_37], %42 {strides = array<i32>} : memref<8x32xf32, #tpu.memory_space<vmem>>, vector<8x32xf32>,
    %c3_i32 = arith.constant 3 : i32
    %44 = arith.cmpi eq, %arg1, %c3_i32 : i32
    %45 = arith.extui %44 : i1 to i32
    %c0_i32_38 = arith.constant 0 : i32
    %46 = arith.cmpi ne, %45, %c0_i32_38 : i32
    scf.if %46 {
      %c0_39 = arith.constant 0 : index
      %c0_40 = arith.constant 0 : index
      %47 = vector.load %arg21[%c0_39, %c0_40] : memref<8x32xf32, #tpu.memory_space<vmem>>, vector<8x32xf32>
      %c0_41 = arith.constant 0 : index
      %c0_42 = arith.constant 0 : index
      %48 = vector.load %arg10[%c0_41, %c0_42] : memref<1x32xf32, #tpu.memory_space<vmem>>, vector<1x32xf32>
      %49 = vector.broadcast %48 : vector<1x32xf32> to vector<8x32xf32>
      %50 = arith.addf %47, %49 : vector<8x32xf32>
      %c0_43 = arith.constant 0 : index
      %c0_44 = arith.constant 0 : index
      %51 = vector.load %arg11[%c0_43, %c0_44] : memref<1x32xf32, #tpu.memory_space<vmem>>, vector<1x32xf32>
      %c0_45 = arith.constant 0 : index
      %c0_46 = arith.constant 0 : index
      %52 = vector.load %arg12[%c0_45, %c0_46] : memref<1x32xf32, #tpu.memory_space<vmem>>, vector<1x32xf32>
      %cst_47 = arith.constant dense<0.000000e+00> : vector<8xf32>
      %53 = vector.multi_reduction <add>, %50, %cst_47 [1] : vector<8x32xf32> to vector<8xf32>
      %54 = vector.shape_cast %53 : vector<8xf32> to vector<8x1xf32>
      %cst_48 = arith.constant 3.200000e+01 : f32
      %55 = vector.broadcast %cst_48 : f32 to vector<8x1xf32>
      %56 = arith.divf %54, %55 : vector<8x1xf32>
      %57 = vector.broadcast %56 : vector<8x1xf32> to vector<8x32xf32>
      %58 = arith.subf %50, %57 : vector<8x32xf32>
      %59 = arith.mulf %58, %58 : vector<8x32xf32>
      %cst_49 = arith.constant dense<0.000000e+00> : vector<8xf32>
      %60 = vector.multi_reduction <add>, %59, %cst_49 [1] : vector<8x32xf32> to vector<8xf32>
      %61 = vector.shape_cast %60 : vector<8xf32> to vector<8x1xf32>
      %cst_50 = arith.constant 3.200000e+01 : f32
      %62 = vector.broadcast %cst_50 : f32 to vector<8x1xf32>
      %63 = arith.divf %61, %62 : vector<8x1xf32>
      %64 = vector.broadcast %56 : vector<8x1xf32> to vector<8x32xf32>
      %65 = arith.subf %50, %64 : vector<8x32xf32>
      %cst_51 = arith.constant 9.99999997E-7 : f32
      %66 = vector.broadcast %cst_51 : f32 to vector<8x1xf32>
      %67 = arith.addf %63, %66 : vector<8x1xf32>
      %68 = math.rsqrt %67 : vector<8x1xf32>
      %69 = vector.broadcast %68 : vector<8x1xf32> to vector<8x32xf32>
      %70 = arith.mulf %65, %69 : vector<8x32xf32>
      %71 = vector.broadcast %51 : vector<1x32xf32> to vector<8x32xf32>
      %72 = arith.mulf %70, %71 : vector<8x32xf32>
      %73 = vector.broadcast %52 : vector<1x32xf32> to vector<8x32xf32>
      %74 = arith.addf %72, %73 : vector<8x32xf32>
      %75 = arith.addf %50, %74 : vector<8x32xf32>
      %c0_52 = arith.constant 0 : index
      %c0_53 = arith.constant 0 : index
      %76 = vector.load %arg13[%c0_52, %c0_53] : memref<32x128xf32, #tpu.memory_space<vmem>>, vector<32x128xf32>
      %cst_54 = arith.constant dense<0.000000e+00> : vector<8x128xf32>
      %77 = tpu.matmul %75, %76, %cst_54 {dimension_numbers = #tpu.dot_dimension_numbers<[1], [0], [0], [1], [0, 0, 1, 1], [], []>} : vector<8x32xf32>, vector<32x128xf32>, vector<8x128xf32> -> vector<8x128xf32>
      %c0_55 = arith.constant 0 : index
      %c0_56 = arith.constant 0 : index
      %78 = vector.load %arg14[%c0_55, %c0_56] : memref<1x128xf32, #tpu.memory_space<vmem>>, vector<1x128xf32>
      %79 = vector.broadcast %78 : vector<1x128xf32> to vector<8x128xf32>
      %80 = arith.addf %77, %79 : vector<8x128xf32>
      %cst_57 = arith.constant 5.000000e-01 : f32
      %81 = vector.broadcast %cst_57 : f32 to vector<8x128xf32>
      %82 = arith.mulf %81, %80 : vector<8x128xf32>
      %cst_58 = arith.constant 4.471500e-02 : f32
      %83 = vector.broadcast %cst_58 : f32 to vector<8x128xf32>
      %84 = arith.mulf %83, %80 : vector<8x128xf32>
      %85 = arith.mulf %84, %80 : vector<8x128xf32>
      %86 = arith.mulf %85, %80 : vector<8x128xf32>
      %87 = arith.addf %80, %86 : vector<8x128xf32>
      %cst_59 = arith.constant 0.797884583 : f32
      %88 = vector.broadcast %cst_59 : f32 to vector<8x128xf32>
      %89 = arith.mulf %88, %87 : vector<8x128xf32>
      %90 = math.tanh %89 : vector<8x128xf32>
      %cst_60 = arith.constant 1.000000e+00 : f32
      %91 = vector.broadcast %cst_60 : f32 to vector<8x128xf32>
      %92 = arith.addf %91, %90 : vector<8x128xf32>
      %93 = arith.mulf %82, %92 : vector<8x128xf32>
      %c0_61 = arith.constant 0 : index
      %c0_62 = arith.constant 0 : index
      %94 = vector.load %arg15[%c0_61, %c0_62] : memref<128x32xf32, #tpu.memory_space<vmem>>, vector<128x32xf32>
      %cst_63 = arith.constant dense<0.000000e+00> : vector<8x32xf32>
      %95 = tpu.matmul %93, %94, %cst_63 {dimension_numbers = #tpu.dot_dimension_numbers<[1], [0], [0], [1], [0, 0, 1, 1], [], []>} : vector<8x128xf32>, vector<128x32xf32>, vector<8x32xf32> -> vector<8x32xf32>
      %c0_64 = arith.constant 0 : index
      %c0_65 = arith.constant 0 : index
      %96 = vector.load %arg16[%c0_64, %c0_65] : memref<1x32xf32, #tpu.memory_space<vmem>>, vector<1x32xf32>
      %97 = vector.broadcast %96 : vector<1x32xf32> to vector<8x32xf32>
      %98 = arith.addf %95, %97 : vector<8x32xf32>
      %c0_66 = arith.constant 0 : index
      %c0_67 = arith.constant 0 : index
      %99 = vector.load %arg17[%c0_66, %c0_67] : memref<1x32xf32, #tpu.memory_space<vmem>>, vector<1x32xf32>
      %c0_68 = arith.constant 0 : index
      %c0_69 = arith.constant 0 : index
      %100 = vector.load %arg18[%c0_68, %c0_69] : memref<1x32xf32, #tpu.memory_space<vmem>>, vector<1x32xf32>
      %cst_70 = arith.constant dense<0.000000e+00> : vector<8xf32>
      %101 = vector.multi_reduction <add>, %98, %cst_70 [1] : vector<8x32xf32> to vector<8xf32>
      %102 = vector.shape_cast %101 : vector<8xf32> to vector<8x1xf32>
      %cst_71 = arith.constant 3.200000e+01 : f32
      %103 = vector.broadcast %cst_71 : f32 to vector<8x1xf32>
      %104 = arith.divf %102, %103 : vector<8x1xf32>
      %105 = vector.broadcast %104 : vector<8x1xf32> to vector<8x32xf32>
      %106 = arith.subf %98, %105 : vector<8x32xf32>
      %107 = arith.mulf %106, %106 : vector<8x32xf32>
      %cst_72 = arith.constant dense<0.000000e+00> : vector<8xf32>
      %108 = vector.multi_reduction <add>, %107, %cst_72 [1] : vector<8x32xf32> to vector<8xf32>
      %109 = vector.shape_cast %108 : vector<8xf32> to vector<8x1xf32>
      %cst_73 = arith.constant 3.200000e+01 : f32
      %110 = vector.broadcast %cst_73 : f32 to vector<8x1xf32>
      %111 = arith.divf %109, %110 : vector<8x1xf32>
      %112 = vector.broadcast %104 : vector<8x1xf32> to vector<8x32xf32>
      %113 = arith.subf %98, %112 : vector<8x32xf32>
      %cst_74 = arith.constant 9.99999997E-7 : f32
      %114 = vector.broadcast %cst_74 : f32 to vector<8x1xf32>
      %115 = arith.addf %111, %114 : vector<8x1xf32>
      %116 = math.rsqrt %115 : vector<8x1xf32>
      %117 = vector.broadcast %116 : vector<8x1xf32> to vector<8x32xf32>
      %118 = arith.mulf %113, %117 : vector<8x32xf32>
      %119 = vector.broadcast %99 : vector<1x32xf32> to vector<8x32xf32>
      %120 = arith.mulf %118, %119 : vector<8x32xf32>
      %121 = vector.broadcast %100 : vector<1x32xf32> to vector<8x32xf32>
      %122 = arith.addf %120, %121 : vector<8x32xf32>
      %123 = arith.addf %75, %122 : vector<8x32xf32>
      %c0_75 = arith.constant 0 : index
      %c0_76 = arith.constant 0 : index
      %124 = vector.load %arg19[%c0_75, %c0_76] : memref<8x32xf32, #tpu.memory_space<vmem>>, vector<8x32xf32>
      tpu.vector_store %arg19[%c0_75, %c0_76], %123 {strides = array<i32>} : memref<8x32xf32, #tpu.memory_space<vmem>>, vector<8x32xf32>,
    } else {
    }
    return
  }
  func.func @transform_0(%arg0: i32, %arg1: i32) -> (i32, i32) {
    %c0_i32 = arith.constant 0 : i32
    %c0_i32_0 = arith.constant 0 : i32
    return %arg0, %c0_i32 : i32, i32
  }
  func.func @transform_1(%arg0: i32, %arg1: i32) -> (i32, i32, i32) {
    %c0_i32 = arith.constant 0 : i32
    %c0_i32_0 = arith.constant 0 : i32
    %c0_i32_1 = arith.constant 0 : i32
    return %arg1, %c0_i32, %c0_i32_0 : i32, i32, i32
  }
  func.func @transform_2(%arg0: i32, %arg1: i32) -> (i32, i32, i32) {
    %c0_i32 = arith.constant 0 : i32
    %c0_i32_0 = arith.constant 0 : i32
    %c0_i32_1 = arith.constant 0 : i32
    return %arg1, %c0_i32, %c0_i32_0 : i32, i32, i32
  }
  func.func @transform_3(%arg0: i32, %arg1: i32) -> (i32, i32, i32) {
    %c0_i32 = arith.constant 0 : i32
    %c0_i32_0 = arith.constant 0 : i32
    %c0_i32_1 = arith.constant 0 : i32
    return %arg1, %c0_i32, %c0_i32_0 : i32, i32, i32
  }
  func.func @transform_4(%arg0: i32, %arg1: i32) -> (i32, i32, i32) {
    %c0_i32 = arith.constant 0 : i32
    %c0_i32_0 = arith.constant 0 : i32
    %c0_i32_1 = arith.constant 0 : i32
    return %arg1, %c0_i32, %c0_i32_0 : i32, i32, i32
  }
  func.func @transform_5(%arg0: i32, %arg1: i32) -> (i32, i32, i32) {
    %c0_i32 = arith.constant 0 : i32
    %c0_i32_0 = arith.constant 0 : i32
    %c0_i32_1 = arith.constant 0 : i32
    return %arg1, %c0_i32, %c0_i32_0 : i32, i32, i32
  }
  func.func @transform_6(%arg0: i32, %arg1: i32) -> (i32, i32, i32) {
    %c0_i32 = arith.constant 0 : i32
    %c0_i32_0 = arith.constant 0 : i32
    %c0_i32_1 = arith.constant 0 : i32
    return %arg1, %c0_i32, %c0_i32_0 : i32, i32, i32
  }
  func.func @transform_7(%arg0: i32, %arg1: i32) -> (i32, i32, i32) {
    %c0_i32 = arith.constant 0 : i32
    %c0_i32_0 = arith.constant 0 : i32
    %c0_i32_1 = arith.constant 0 : i32
    return %arg1, %c0_i32, %c0_i32_0 : i32, i32, i32
  }
  func.func @transform_8(%arg0: i32, %arg1: i32) -> (i32, i32) {
    %c0_i32 = arith.constant 0 : i32
    %c0_i32_0 = arith.constant 0 : i32
    %c0_i32_1 = arith.constant 0 : i32
    return %c0_i32, %c0_i32_0 : i32, i32
  }
  func.func @transform_9(%arg0: i32, %arg1: i32) -> (i32, i32) {
    %c0_i32 = arith.constant 0 : i32
    %c0_i32_0 = arith.constant 0 : i32
    %c0_i32_1 = arith.constant 0 : i32
    return %c0_i32, %c0_i32_0 : i32, i32
  }
  func.func @transform_10(%arg0: i32, %arg1: i32) -> (i32, i32) {
    %c0_i32 = arith.constant 0 : i32
    %c0_i32_0 = arith.constant 0 : i32
    %c0_i32_1 = arith.constant 0 : i32
    return %c0_i32, %c0_i32_0 : i32, i32
  }
  func.func @transform_11(%arg0: i32, %arg1: i32) -> (i32, i32) {
    %c0_i32 = arith.constant 0 : i32
    %c0_i32_0 = arith.constant 0 : i32
    %c0_i32_1 = arith.constant 0 : i32
    return %c0_i32, %c0_i32_0 : i32, i32
  }
  func.func @transform_12(%arg0: i32, %arg1: i32) -> (i32, i32) {
    %c0_i32 = arith.constant 0 : i32
    %c0_i32_0 = arith.constant 0 : i32
    %c0_i32_1 = arith.constant 0 : i32
    return %c0_i32, %c0_i32_0 : i32, i32
  }
  func.func @transform_13(%arg0: i32, %arg1: i32) -> (i32, i32) {
    %c0_i32 = arith.constant 0 : i32
    %c0_i32_0 = arith.constant 0 : i32
    %c0_i32_1 = arith.constant 0 : i32
    return %c0_i32, %c0_i32_0 : i32, i32
  }
  func.func @transform_14(%arg0: i32, %arg1: i32) -> (i32, i32) {
    %c0_i32 = arith.constant 0 : i32
    %c0_i32_0 = arith.constant 0 : i32
    %c0_i32_1 = arith.constant 0 : i32
    return %c0_i32, %c0_i32_0 : i32, i32
  }
  func.func @transform_15(%arg0: i32, %arg1: i32) -> (i32, i32) {
    %c0_i32 = arith.constant 0 : i32
    %c0_i32_0 = arith.constant 0 : i32
    %c0_i32_1 = arith.constant 0 : i32
    return %c0_i32, %c0_i32_0 : i32, i32
  }
  func.func @transform_16(%arg0: i32, %arg1: i32) -> (i32, i32) {
    %c0_i32 = arith.constant 0 : i32
    %c0_i32_0 = arith.constant 0 : i32
    %c0_i32_1 = arith.constant 0 : i32
    return %c0_i32, %c0_i32_0 : i32, i32
  }
  func.func @transform_17(%arg0: i32, %arg1: i32) -> (i32, i32) {
    %c0_i32 = arith.constant 0 : i32
    %c0_i32_0 = arith.constant 0 : i32
    return %arg0, %c0_i32 : i32, i32
  }
  func.func @transform_18(%arg0: i32, %arg1: i32) -> (i32, i32, i32, i32) {
    %c0_i32 = arith.constant 0 : i32
    %c0_i32_0 = arith.constant 0 : i32
    %c0_i32_1 = arith.constant 0 : i32
    return %arg0, %arg1, %c0_i32, %c0_i32_0 : i32, i32, i32, i32
  }
}

</mosaic_0001>

<bundles_post_ra>
// kernel: tpu_custom_call.1
= control target key start
LH: loop header
LB: loop body
LE: loop exit
PB: predicated region body
PF: predicated region fallthrough
CT: control target
= control target key end

     0   :  { %s2691_s0 = inlined_call_operand.vmem [shape: f32[16,32], index: 0, kind: input, shape index: {}]   ;;  %s2692_s1 = inlined_call_operand.vmem [shape: f32[4,32,8], index: 1, kind: input, shape index: {}]   ;;  %s2693_s2 = inlined_call_operand.vmem [shape: f32[4,1,8], index: 2, kind: input, shape index: {}]   ;;  %s2694_s3 = inlined_call_operand.vmem [shape: f32[4,32,8], index: 3, kind: input, shape index: {}]   ;;  %s2695_s4 = inlined_call_operand.vmem [shape: f32[4,1,8], index: 4, kind: input, shape index: {}]   ;;  %s2696_s5 = inlined_call_operand.vmem [shape: f32[4,32,8], index: 5, kind: input, shape index: {}]   ;;  %s2697_s6 = inlined_call_operand.vmem [shape: f32[4,1,8], index: 6, kind: input, shape index: {}]   ;;  %s2698_s7 = inlined_call_operand.vmem [shape: f32[4,8,32], index: 7, kind: input, shape index: {}]   ;;  %s2699_s8 = inlined_call_operand.vmem [shape: f32[1,32], index: 8, kind: input, shape index: {}]   ;;  %s2700_s9 = inlined_call_operand.vmem [shape: f32[1,32], index: 9, kind: input, shape index: {}]   ;;  %s2701_s10 = inlined_call_operand.vmem [shape: f32[1,32], index: 10, kind: input, shape index: {}]   ;;  %s2702_s11 = inlined_call_operand.vmem [shape: f32[32,128], index: 11, kind: input, shape index: {}]   ;;  %s2703_s12 = inlined_call_operand.vmem [shape: f32[1,128], index: 12, kind: input, shape index: {}]   ;;  %s2704_s13 = inlined_call_operand.vmem [shape: f32[128,32], index: 13, kind: input, shape index: {}]   ;;  %s2705_s14 = inlined_call_operand.vmem [shape: f32[1,32], index: 14, kind: input, shape index: {}]   ;;  %s2706_s15 = inlined_call_operand.vmem [shape: f32[1,32], index: 15, kind: input, shape index: {}]   ;;  %s2707_s16 = inlined_call_operand.vmem [shape: f32[1,32], index: 16, kind: input, shape index: {}]   ;;  %s2708_s17 = inlined_call_operand.hbm [shape: f32[16,32], index: 17, kind: output, shape index: {0}]   ;;  %s2709_s18 = inlined_call_operand.hbm [shape: f32[2,4,8,8], index: 18, kind: output, shape index: {1}]  }
   0x1   :  { %2735 = sst [smem:[#allocation27_spill]] %s2691_s0 }
   0x2   :  { %2736 = sst [smem:[#allocation28_spill]] %s2692_s1 }
   0x3   :  { %2737 = sst [smem:[#allocation29_spill]] %s2693_s2 }
   0x4   :  { %2738 = sst [smem:[#allocation30_spill]] %s2700_s9 }
   0x5   :  { %2739 = sst [smem:[#allocation31_spill]] %s2701_s10 }
   0x6   :  { %2740 = sst [smem:[#allocation32_spill]] %s2703_s12 }
   0x7   :  { %2741 = sst [smem:[#allocation33_spill]] %s2704_s13 }
   0x8   :  { %2742 = sst [smem:[#allocation34_spill]] %s2705_s14 }
   0x9   :  { %2743 = sst [smem:[#allocation35_spill]] %s2706_s15 }
   0xa   :  { %2744 = sst [smem:[#allocation36_spill]] %s2707_s16 }
   0xb   :  { %2745 = sst [smem:[#allocation37_spill]] %s2708_s17 }
   0xc   :  { %2746 = sst [smem:[#allocation38_spill]] %s2709_s18 }
   0xd   :  { %24 = vsyncpa [#allocation4], 0 }
   0xe   :  { %26 = vsyncpa [#allocation4 + $0x1], 0 }
   0xf   :  { %27 = vsyncpa [#allocation6], 0 }
  0x10   :  { %29 = vsyncpa [#allocation6 + $0x1], 0  ;;  %s2285_s27 = smov 0   ;;  %s2287_s28 = smov 0  }
  0x11   :  { %s2289_s29 = smov 0   ;;  %s2291_s30 = smov 0  }
  0x12   :  { %s2293_s0 = smov 0   ;;  %s2295_s19 = smov 0  }
  0x13   :  { %s2297_s1 = smov 0   ;;  %s2299_s20 = smov 0  }
  0x14   :  { %s2301_s21 = smov 0   ;;  %s2303_s22 = smov 0  }
  0x15   :  { %s2305_s2 = smov 0  }
  0x16 LB: > { %2747 = sst [smem:[#allocation9_spill]] %s2139_s27  ;;  %s1682_s23 = sadd.s32 4294967295, %s2179_s2   ;;  %s2179_s2 = sphi %s2305_s2, %s35_s2   ;;  %s2175_s22 = sphi %s2303_s22, %s2807_s22   ;;  %s2171_s21 = sphi %s2301_s21, %s2806_s21   ;;  %s2167_s20 = sphi %s2299_s20, %s2805_s20   ;;  %s2163_s1 = sphi %s2297_s1, %s2804_s1   ;;  %s2159_s19 = sphi %s2295_s19, %s2803_s19   ;;  %s2155_s0 = sphi %s2293_s0, %s2802_s0   ;;  %s2151_s30 = sphi %s2291_s30, %s2801_s30   ;;  %s2147_s29 = sphi %s2289_s29, %s2800_s29   ;;  %s2143_s28 = sphi %s2287_s28, %s2799_s28   ;;  %s2139_s27 = sphi %s2285_s27, %s2798_s27  }
  0x17   : > { %2748 = sst [smem:[#allocation10_spill]] %s2143_s28  ;;  %s1683_s24 = sadd.s32 4294967294, %s2179_s2  }
  0x18   : > { %2749 = sst [smem:[#allocation11_spill]] %s2147_s29  ;;  %s44_s25 = sadd.s32 1, %s2171_s21 }
  0x19   : > { %2750 = sst [smem:[#allocation12_spill]] %s2151_s30  ;;  %s47_s26 = sadd.s32 1, %s2175_s22 }
  0x1a   : > { %2751 = sst [smem:[#allocation13_spill]] %s2155_s0  ;;  %p45_p0 = scmp.ge.s32.totalorder %s44_s25, 4 }
  0x1b   : > { %2752 = sst [smem:[#allocation14_spill]] %s2159_s19  ;;  %s451_s18 = sadd.s32 1, %s2159_s19 }
  0x1c   : > { %2753 = sst [smem:[#allocation15_spill]] %s2167_s20  ;;  %p461_p1 = scmp.ne.s32.totalorder %s2159_s19, %s2155_s0 }
  0x1d   : > { %2754 = sst [smem:[#allocation16_spill]] %s2171_s21  ;;  %p2347_p2 = scmp.eq.s32.totalorder %s1682_s23, 7 }
  0x1e   : > { %2755 = sst [smem:[#allocation17_spill]] %s2175_s22  ;;  %s2809_s25 = smov (%p45_p0, %s44_s25), 0 }
  0x1f   : > { %2756 = sst [smem:[#allocation18_spill]] %s2179_s2  ;;  %s2811_s26 = smov (!%p45_p0, %s47_s26), %s2175_s22 }
  0x20   : > { %2758 = sst [smem:[#allocation19_spill]] %s2809_s25  ;;  %p2356_p3 = por %p2347_p2, %p461_p1 }
  0x21   : > { %p467_p4 = scmp.ne.s32.totalorder %s2155_s0, %s2151_s30  ;;  %p49_p5 = scmp.ge.s32.totalorder %s2811_s26, 2 }
  0x22   : > { %s2759_s16 = scalar_select %p2356_p3, 1, 0 }
  0x23   : > { %p2362_p6 = scmp.eq.s32.totalorder %s1683_s24, 7  ;;  %s475_s15 = ssub.s32 %s2171_s21, %s2809_s25 }
  0x24   : > { %2760 = sst [smem:[#allocation20_spill]] %s2759_s16  ;;  %s479_s14 = sadd.s32 1, %s2147_s29 }
  0x25   : > { %s2813_s26 = smov (%p49_p5, %s2811_s26), 0  ;;  %p2373_p7 = por %p2362_p6, %p467_p4 }
  0x26   : > { %2762 = sst [smem:[#allocation21_spill]] %s2813_s26  ;;  %p489_p8 = scmp.ne.s32.totalorder %s2147_s29, %s2143_s28 }
  0x27   : > { %s2763_s12 = scalar_select %p2373_p7, 1, 0 }
  0x28   : > { %s448_s30 = ssub.s32 %s2175_s22, %s2813_s26  ;;  %p495_p9 = scmp.ne.s32.totalorder %s2143_s28, %s2139_s27 }
  0x29   : > { %2764 = sst [smem:[#allocation22_spill]] %s2763_s12  ;;  %p449_p10 = scmp.eq.s32.totalorder %s448_s30, 0 }
  0x2a   : > { %s476_s24 = sor.u32 %s475_s15, %s448_s30  ;;  %p2385_p12 = por %p489_p8, %p2347_p2 }
  0x2b   : > { %p477_p11 = scmp.eq.s32.totalorder %s476_s24, 0  ;;  %p2397_p13 = por %p495_p9, %p2362_p6 }
  0x2c   : > { %s2765_s16 = scalar_select %p2385_p12, 1, 0 }
  0x2d   : > { %s2390_s25 = scalar_select %p449_p10, %s2159_s19, %s451_s18  }
  0x2e   : > { %2766 = sst [smem:[#allocation23_spill]] %s2765_s16  ;;  %p1686_p0 = scmp.ge.s32.totalorder %s2179_s2, 1 }
  0x2f   : > { %2767 = sst [smem:[#allocation24_spill]] %s2390_s25  ;;  %p597_p1 = scmp.lt.s32.totalorder %s2179_s2, 9 }
  0x30   : > { %s2393_s21 = scalar_select %p477_p11, %s2147_s29, %s479_s14  }
  0x31   : > { %s2769_s10 = scalar_select %p2397_p13, 1, 0 }
  0x32   : > { %2768 = sst [smem:[#allocation25_spill]] %s2393_s21  ;;  %p598_p4 = pnand %p1686_p0, %p597_p1 }
  0x33   : > { %2770 = sst [smem:[#allocation26_spill]] %s2769_s10  ;;  %s2719_s15 = sand.u32 (!%p598_p4), 1, %s2155_s0  }
  0x34   : > { %601 = sbr.rel (%p598_p4) target bundleno = 2392 (0x958), region = 88  ;;  %s2720_s14 = sand.u32 (!%p598_p4), 1, %s2143_s28  }
  0x35   : > { %s2407_s17 = sshll.u32 (!%p598_p4), %s2719_s15, 3  ;;  %s2411_s18 = sshll.u32 (!%p598_p4), %s2720_s14, 3 }
  0x36   : > { %p683_p2 = scmp.lt.s32.totalorder (!%p598_p4), %s2167_s20, 1  ;;  %p687_p5 = scmp.lt.s32.totalorder (!%p598_p4), %s2163_s1, 3 }
  0x37   : > { %s2771_s15 = sld [smem:[#allocation27_spill]] (!%p598_p4)  ;;  %s2772_s29 = sld [smem:[#allocation28_spill]] (!%p598_p4) }
  0x38   : > { %s2773_s2 = sld [smem:[#allocation29_spill]] (!%p598_p4)  ;;  %s675_s28 = scalar_lea.vmem (!%p598_p4), [#allocation3], %s2407_s17 }
  0x39   : > { %s682_s0 = scalar_lea.vmem (!%p598_p4), [#allocation5], %s2411_s18  ;;  %p1697_p6 = scmp.ne.s32.totalorder (!%p598_p4), %s2163_s1, 0 }
  0x3b   : > { %s684_s30 = scalar_select %p683_p2, %s2167_s20, 1 }
  0x3c   : > { %s2417_s23 = scalar_select %p687_p5, %s2163_s1, 3 }
  0x3d   : > { %s1689_s24 = sshll.u32 %s684_s30, 3  ;;  %718 = sbr.rel (%p1697_p6) target bundleno = 68 (0x44), region = 92  ;;  %vm719_vm0 = vcmask (!%p1697_p6), 261120   ;;  %v2181_v0 = vmov (!%p1697_p6), 0.0  }
  0x3e   : > { %s2422_s25 = scalar_lea.vmem %s2771_s15, %s1689_s24  ;;  %s1724_s14 = sshll.u32 %s2417_s23, 5  ;;  %720 = vst.msk [vmem:[#allocation2] sm:$0xff] (!%p1697_p6), %vm719_vm0, %v2181_v0 }
  0x3f   : > { %s2428_s10 = scalar_lea.vmem %s2772_s29, %s1724_s14  ;;  %s694_s16 = scalar_lea.vmem %s2773_s2, %s2417_s23 }
  0x40   : > { %s699_s20 = scalar_lea.vmem %s2694_s3, %s1724_s14  ;;  %s702_s22 = scalar_lea.vmem %s2695_s4, %s2417_s23 }
  0x41   : > { %s2444_s24 = scalar_lea.vmem %s2696_s5, %s1724_s14  ;;  %s710_s21 = scalar_lea.vmem %s2697_s6, %s2417_s23 }
  0x42   : > { %s1696_s13 = sshll.u32 %s2417_s23, 3 }
  0x43   : > { %s2454_s2 = scalar_lea.vmem %s2698_s7, %s1696_s13 }
  0x44 PF: > { %v807_v1 = vld [vmem:[%s699_s20] sm:$0xff]  ;;  %v808_v2 = vld [vmem:[%s699_s20 + $0x8] sm:$0xff]  ;;  %v2182_v4 = vmov 0.0|0.0   ;;  %v809_v7 = vld [vmem:[%s699_s20 + $0x10] sm:$0xff]  ;;  %vm2183_vm1 = vmmov 0   ;;  %v2184_v10 = vmov 0.0  }
  0x45   : > { %v722_v3 = vld [vmem:[%s2428_s10] sm:$0xff]  ;;  %1870 = vmatprep.subr.bf16.mxu1 %v2182_v4  ;;  %v1871_v5 = vpack.c.bf16 %v808_v2, %v807_v1  ;;  %1864 = vmatprep.subr.bf16.mxu0 %v2182_v4  ;;  %v723_v6 = vld [vmem:[%s2428_s10 + $0x8] sm:$0xff]  ;;  %v810_v8 = vld [vmem:[%s699_s20 + $0x18] sm:$0xff]  ;;  %vm733_vm2 = vcmask 261120   ;;  %vm969_vm3 = vcmask 64512   ;;  %p1708_p8 = scmp.ne.s32.totalorder %s2163_s1, 3 }
  0x46   : > { %v1865_v9 = vpack.c.bf16 %v723_v6, %v722_v3  ;;  %1789 = vmatprep.mubr.msk.f32.mxu1 %vm2183_vm1, %v2184_v10  ;;  %v724_v11 = vld [vmem:[%s2428_s10 + $0x10] sm:$0xff]  ;;  %v725_v12 = vld [vmem:[%s2428_s10 + $0x18] sm:$0xff]  ;;  %1778 = vmatprep.mubr.msk.f32.mxu0 %vm2183_vm1, %v2184_v10  ;;  %v1874_v13 = vpack.c.bf16 %v810_v8, %v809_v7  ;;  %v721_v15 = vld [vmem:[%s2422_s25] sm:$0xff]  ;;  %v2185_v0 = vmov (!%p1708_p8), 0.0|0.0   ;;  %vm2186_vm4 = vmmov (!%p1708_p8), 0   ;;  %s2775_s9 = sld [smem:[#allocation33_spill]] (!%p1708_p8) }
  0x47   : > { %1872 = vmatpush3.bf16.msra.mxu1 %v1871_v5  ;;  %v1868_v14 = vpack.c.bf16 %v725_v12, %v724_v11  ;;  %v1700_v16 = vld [vmem:[%s702_s22] ss:$0 sm:$0xff]  ;;  %v889_v25 = vld [vmem:[%s2444_s24 + $0x8] sm:$0xff]  ;;  %v890_v26 = vld [vmem:[%s2444_s24 + $0x10] sm:$0xff]  ;;  %v2187_v3 = vmov (!%p1708_p8), 0.0   ;;  %s2777_s30 = sld [smem:[#allocation31_spill]] (!%p1708_p8) }
  0x48   : > { %1866 = vmatpush3.bf16.msra.mxu0 %v1865_v9  ;;  %1873 = vmatprep.subr.bf16.mxu1 %v2182_v4  ;;  %v1698_v17 = vld [vmem:[%s694_s16] ss:$0 sm:$0xff]  ;;  %v891_v28 = vld [vmem:[%s2444_s24 + $0x18] sm:$0xff]  ;;  %v1253_v62 = vld [vmem:[%s2702_s11 + $0x8] sm:$0xff] (!%p1708_p8)  ;;  %s2776_s16 = sld [smem:[#allocation30_spill]] (!%p1708_p8)  ;;  %s2778_s20 = sld [smem:[#allocation32_spill]] (!%p1708_p8) }
  0x49   : > { %1867 = vmatprep.subr.bf16.mxu0 %v2182_v4  ;;  %v888_v24 = vld [vmem:[%s2444_s24] sm:$0xff]  ;;  %v1880_v29 = vpack.c.bf16 %v891_v28, %v890_v26  ;;  %v1254_v63 = vld [vmem:[%s2702_s11 + $0x10] sm:$0xff] (!%p1708_p8)  ;;  %v1255_v2 = vld [vmem:[%s2702_s11 + $0x18] sm:$0xff] (!%p1708_p8)  ;;  %s2779_s14 = sld [smem:[#allocation34_spill]] (!%p1708_p8)  ;;  %s2780_s22 = sld [smem:[#allocation35_spill]] (!%p1708_p8) }
  0x4a   : > { %v1877_v27 = vpack.c.bf16 %v889_v25, %v888_v24  ;;  %v1702_v39 = vld [vmem:[%s710_s21] ss:$0 sm:$0xff]  ;;  %s2781_s24 = sld [smem:[#allocation36_spill]] (!%p1708_p8) }
  0x4b   : > { %1875 = vmatpush3.bf16.msra.mxu1 %v1874_v13  ;;  %v1132_v42 = vld [vmem:[%s2454_s2] sm:$0xff] }
  0x4c   : > { %1869 = vmatpush3.bf16.msra.mxu0 %v1868_v14  ;;  %1803 = vmatprep.subr.mxu1 %v2184_v10  ;;  %v1131_v48 = vld [vmem:[#allocation2] sm:$0xff]  ;;  %v1346_v6 = vld [vmem:[%s2775_s9 + $0x8] sm:$0xff] (!%p1708_p8)  ;;  %v1351_v24 = vld [vmem:[%s2775_s9 + $0x30] sm:$0xff] (!%p1708_p8) }
  0x4d   : > { %1876 = vmatprep.subr.bf16.mxu0 %v2182_v4  ;;  %v1709_v53 = vld [vmem:[%s2699_s8] ss:$0 sm:$0xff] (!%p1708_p8)  ;;  %v1352_v25 = vld [vmem:[%s2775_s9 + $0x38] sm:$0xff] (!%p1708_p8)  ;;  %v1354_v28 = vld [vmem:[%s2775_s9 + $0x48] sm:$0xff] (!%p1708_p8) }
  0x4e   : > { %1790 = vmatmul.mubr.msk.f32.vlgmr.msra.gmra.mrb[0].mxu1 %vm733_vm2, %v721_v15  ;;  %v1252_v61 = vld [vmem:[%s2702_s11] sm:$0xff] (!%p1708_p8)  ;;  %v1898_v26 = vpack.c.bf16 (!%p1708_p8), %v1352_v25, %v1351_v24 }
  0x4f   : > { %1779 = vmatmul.mubr.msk.f32.vlgmr.msra.gmra.mrb[0].mxu0 %vm733_vm2, %v721_v15  ;;  %1805 = vmatprep.mubr.msk.f32.mxu1 %vm2183_vm1, %v2184_v10  ;;  %v1883_v1 = vpack.c.bf16 (!%p1708_p8), %v1253_v62, %v1252_v61  ;;  %v1345_v5 = vld [vmem:[%s2775_s9] sm:$0xff] (!%p1708_p8) }
  0x50   : > { %1800 = vmatprep.mubr.msk.f32.mxu0 %vm2183_vm1, %v2184_v10  ;;  %1878 = vmatpush3.bf16.msra.mxu0 %v1877_v27  ;;  %v1889_v7 = vpack.c.bf16 (!%p1708_p8), %v1346_v6, %v1345_v5  ;;  %v1710_v12 = vld [vmem:[%s2776_s16] ss:$0 sm:$0xff] (!%p1708_p8) }
  0x51   : > { %1879 = vmatprep.subr.bf16.mxu0 %v2182_v4  ;;  %v1886_v4 = vpack.c.bf16 (!%p1708_p8), %v1255_v2, %v1254_v63  ;;  %v1711_v14 = vld [vmem:[%s2777_s30] ss:$0 sm:$0xff] (!%p1708_p8) }
  0x52   : > { %v1353_v27 = vld [vmem:[%s2775_s9 + $0x40] sm:$0xff] (!%p1708_p8) }
  0x53   : > { %v1715_v2 = vld [vmem:[%s2780_s22] ss:$0 sm:$0xff] (!%p1708_p8) }
  0x54   : > { %1881 = vmatpush3.bf16.msra.mxu0 %v1880_v29  ;;  %v1901_v29 = vpack.c.bf16 (!%p1708_p8), %v1354_v28, %v1353_v27 }
  0x55   : > { %1813 = vmatprep.subr.mxu0 %v2184_v10 }
  0x57   : > { %1801 = vmatmul.mubr.msk.f32.vlgmr.msra.gmra.mrb[2].mxu0 %vm733_vm2, %v721_v15 }
  0x58   : > { %1815 = vmatprep.mubr.msk.f32.mxu0 %vm2183_vm1, %v2184_v10  ;;  %1814 = vmatpush3.msra.mxu0 %v1132_v42 }
  0x59   : > { %1882 = vmatprep.subr.bf16.mxu0 (!%p1708_p8), %v2185_v0 }
 0x121   : > { %v884_v18 = vpop.f32.mrb[0].mxu1 }
 0x122   : > { %v885_v19 = vadd.f32 %v1700_v16, %v884_v18  ;;  %v1791_v20 = vpop.f32.mrb[1].mxu1  ;;  %v803_v21 = vpop.f32.mrb[0].mxu0  ;;  %v1347_v18 = vld [vmem:[%s2775_s9 + $0x10] sm:$0xff] (!%p1708_p8) }
 0x123   : > { %v804_v22 = vadd.f32 %v1698_v17, %v803_v21  ;;  %v1780_v23 = vpop.f32.mrb[1].mxu0  ;;  %v1349_v21 = vld [vmem:[%s2775_s9 + $0x20] sm:$0xff] (!%p1708_p8) }
 0x124   : > { %1804 = vmatpush3.xpose.msk.msra.mxu1 %vm969_vm3, %v885_v19  ;;  %v1348_v19 = vld [vmem:[%s2775_s9 + $0x18] sm:$0xff] (!%p1708_p8) }
 0x125   : > { %1808 = vmatprep.subr.mxu1 %v2184_v10  ;;  %v1892_v20 = vpack.c.bf16 (!%p1708_p8), %v1348_v19, %v1347_v18 }
 0x127   : > { %1806 = vmatmul.mubr.msk.f32.vlgmr.msra.gmra.mrb[2].mxu1 %vm969_vm3, %v804_v22  ;;  %v1350_v22 = vld [vmem:[%s2775_s9 + $0x28] sm:$0xff] (!%p1708_p8) }
 0x128   : > { %1810 = vmatprep.mubr.msk.f32.mxu1 %vm2183_vm1, %v2184_v10  ;;  %v1895_v23 = vpack.c.bf16 (!%p1708_p8), %v1350_v22, %v1349_v21 }
 0x12a   : > { %v965_v38 = vpop.f32.mrb[2].mxu0 }
 0x12b   : > { %v1802_v40 = vpop.f32.mrb[3].mxu0  ;;  %v966_v41 = vadd.f32 %v1702_v39, %v965_v38  ;;  %v1712_v39 = vld [vmem:[%s2778_s20] ss:$0 sm:$0xff] (!%p1708_p8) }
 0x12d   : > { %1809 = vmatpush3.msra.mxu1 %v966_v41 }
 0x12e   : > { %1888 = vmatprep.subr.bf16.mxu1 (!%p1708_p8), %v2185_v0 }
 0x1fa   : > { %v1042_v30 = vpop.f32.mrb[2].mxu1 }
 0x1fb   : > { %v1807_v31 = vpop.f32.mrb[3].mxu1  ;;  %v1046_v32 = vsel %vm969_vm3, %v1042_v30, -inf }
 0x1fc   : > { %1047 = vmax.xlane.f32.xlu0 %v1046_v32  ;;  %v1356_v31 = vld [vmem:[%s2775_s9 + $0x58] sm:$0xff] (!%p1708_p8) }
 0x289   : > { %v1048_v33 = vpop.xlane.xlu0 %1047 }
 0x28a   : > { %v1049_v34 = vsub.f32 %v1042_v30, %v1048_v33  ;;  %v1355_v30 = vld [vmem:[%s2775_s9 + $0x50] sm:$0xff] (!%p1708_p8)  ;;  %v1357_v33 = vld [vmem:[%s2775_s9 + $0x60] sm:$0xff] (!%p1708_p8) }
 0x28b   : > { %v1904_v32 = vpack.c.bf16 (!%p1708_p8), %v1356_v31, %v1355_v30 }
 0x28c   : > { %v1050_v35 = vmul.f32 1.442695, %v1049_v34  ;;  %v1358_v34 = vld [vmem:[%s2775_s9 + $0x68] sm:$0xff] (!%p1708_p8) }
 0x28e   : > { %2019 = vpow2.f32 %v1050_v35  ;;  %v1907_v35 = vpack.c.bf16 (!%p1708_p8), %v1358_v34, %v1357_v33 }
 0x298   : > { %v2020_v36 = vpop.eup %2019 }
 0x299   : > { %v1052_v37 = vsel %vm969_vm3, %v2020_v36, 0.0 }
 0x29a   : > { %1053 = vadd.xlane.f32.xlu0 %v1052_v37  ;;  %v1360_v37 = vld [vmem:[%s2775_s9 + $0x78] sm:$0xff] (!%p1708_p8) }
 0x327   : > { %v1054_v43 = vpop.xlane.xlu0 %1053 }
 0x328   : > { %2021 = vrcp.f32 %v1054_v43 }
 0x332   : > { %v2022_v44 = vpop.eup %2021 }
 0x333   : > { %v1056_v45 = vmul.f32 %v2022_v44, %v2020_v36  ;;  %v1359_v36 = vld [vmem:[%s2775_s9 + $0x70] sm:$0xff] (!%p1708_p8) }
 0x334   : > { %v1910_v38 = vpack.c.bf16 (!%p1708_p8), %v1360_v37, %v1359_v36 }
 0x335   : > { %1057 = vst.msk [vmem:[%s682_s0] sm:$0xff] %vm969_vm3, %v1056_v45  ;;  %1811 = vmatmul.mubr.msk.f32.vlgmr.msra.gmra.mrb[4].mxu1 %vm969_vm3, %v1056_v45 }
 0x336   : > { %1861 = vmatprep.mubr.msk.f32.mxu1 (!%p1708_p8), %vm2186_vm4, %v2187_v3  ;;  %1890 = vmatpush3.bf16.msra.mxu1 (!%p1708_p8), %v1889_v7 }
 0x337   : > { %1891 = vmatprep.subr.bf16.mxu1 (!%p1708_p8), %v2185_v0 }
 0x33a   : > { %1893 = vmatpush3.bf16.msra.mxu1 (!%p1708_p8), %v1892_v20 }
 0x33b   : > { %1894 = vmatprep.subr.bf16.mxu1 (!%p1708_p8), %v2185_v0 }
 0x33e   : > { %1896 = vmatpush3.bf16.msra.mxu1 (!%p1708_p8), %v1895_v23 }
 0x33f   : > { %1897 = vmatprep.subr.bf16.mxu1 (!%p1708_p8), %v2185_v0 }
 0x342   : > { %1899 = vmatpush3.bf16.msra.mxu1 (!%p1708_p8), %v1898_v26 }
 0x343   : > { %1900 = vmatprep.subr.bf16.mxu1 (!%p1708_p8), %v2185_v0 }
 0x346   : > { %1902 = vmatpush3.bf16.msra.mxu1 (!%p1708_p8), %v1901_v29 }
 0x347   : > { %1903 = vmatprep.subr.bf16.mxu1 (!%p1708_p8), %v2185_v0 }
 0x34a   : > { %1905 = vmatpush3.bf16.msra.mxu1 (!%p1708_p8), %v1904_v32 }
 0x34b   : > { %1906 = vmatprep.subr.bf16.mxu1 (!%p1708_p8), %v2185_v0 }
 0x34e   : > { %1908 = vmatpush3.bf16.msra.mxu1 (!%p1708_p8), %v1907_v35 }
 0x34f   : > { %1909 = vmatprep.subr.bf16.mxu1 (!%p1708_p8), %v2185_v0 }
 0x352   : > { %1911 = vmatpush3.bf16.msra.mxu1 (!%p1708_p8), %v1910_v38 }
 0x408   : > { %v1127_v46 = vpop.f32.mrb[4].mxu1 }
 0x409   : > { %v1812_v47 = vpop.f32.mrb[5].mxu1  ;;  %1816 = vmatmul.mubr.msk.f32.vlgmr.msra.gmra.mrb[4].mxu0 %vm969_vm3, %v1127_v46 }
 0x40a   : > { %1826 = vmatprep.mubr.msk.f32.mxu0 (!%p1708_p8), %vm2186_vm4, %v2187_v3  ;;  %1884 = vmatpush3.bf16.msra.mxu0 (!%p1708_p8), %v1883_v1 }
 0x40b   : > { %1885 = vmatprep.subr.bf16.mxu0 (!%p1708_p8), %v2185_v0 }
 0x40e   : > { %1887 = vmatpush3.bf16.msra.mxu0 (!%p1708_p8), %v1886_v4  ;;  %v1716_v4 = vld [vmem:[%s2781_s24] ss:$0 sm:$0xff] (!%p1708_p8) }
 0x4d9   : > { %1211 = sbr.rel (%p1708_p8) target bundleno = 2341 (0x925), region = 96 }
 0x4dc   : > { %v1202_v49 = vpop.f32.mrb[4].mxu0 }
 0x4dd   : > { %v1206_v50 = vadd.f32 %v1202_v49, %v1131_v48  ;;  %v1817_v51 = vpop.f32.mrb[5].mxu0 }
 0x4df   : > { %1207 = vst.msk [vmem:[#allocation2] sm:$0xff] %vm733_vm2, %v1206_v50 }
 0x4e6   : > { %v1212_v52 = vld [vmem:[#allocation2] sm:$0xff] }
 0x4e7   : > { %v1220_v54 = vadd.f32 %v1709_v53, %v1212_v52  ;;  %v1714_v52 = vld [vmem:[%s2779_s14] ss:$0 sm:$0xff] }
 0x4e9   : > { %v1223_v55 = vsel %vm733_vm2, %v1220_v54, 0.0 }
 0x4ea   : > { %1224 = vadd.xlane.f32.xlu0 %v1223_v55 }
 0x577   : > { %v1225_v56 = vpop.xlane.xlu0 %1224 }
 0x578   : > { %v1227_v57 = vmul.f32 0.03125, %v1225_v56 }
 0x57a   : > { %v1228_v58 = vsub.f32 %v1220_v54, %v1227_v57 }
 0x57c   : > { %v1229_v59 = vmul.f32 %v1228_v58, %v1228_v58 }
 0x57e   : > { %v1230_v60 = vsel %vm733_vm2, %v1229_v59, 0.0 }
 0x57f   : > { %1231 = vadd.xlane.f32.xlu0 %v1230_v60 }
 0x60c   : > { %v1232_v8 = vpop.xlane.xlu0 %1231 }
 0x60d   : > { %v1233_v9 = vmul.f32 0.03125, %v1232_v8 }
 0x60f   : > { %v1234_v10 = vadd.f32 1e-06, %v1233_v9 }
 0x611   : > { %2023 = vrsqrt.f32 %v1234_v10 }
 0x61b   : > { %v2024_v11 = vpop.eup %2023 }
 0x61c   : > { %v1236_v13 = vmul.f32 %v2024_v11, %v1228_v58 }
 0x61e   : > { %v1243_v15 = vmul.f32 %v1710_v12, %v1236_v13 }
 0x620   : > { %v1250_v16 = vadd.f32 %v1711_v14, %v1243_v15 }
 0x622   : > { %v2533_v17 = vadd.f32 %v1250_v16, %v1220_v54 }
 0x624   : > { %1827 = vmatmul.mubr.msk.f32.vlgmr.msra.gmra.mrb[0].mxu0 %vm733_vm2, %v2533_v17 }
 0x6f7   : > { %v1332_v40 = vpop.f32.mrb[0].mxu0 }
 0x6f8   : > { %v1333_v41 = vadd.f32 %v1712_v39, %v1332_v40  ;;  %v1828_v42 = vpop.f32.mrb[1].mxu0 }
 0x6fa   : > { %v1337_v43 = vmul.f32 0.044715, %v1333_v41  ;;  %v1336_v49 = vmul.f32 0.5, %v1333_v41 }
 0x6fc   : > { %v1338_v44 = vmul.f32 %v1337_v43, %v1333_v41 }
 0x6fe   : > { %v1339_v45 = vmul.f32 %v1338_v44, %v1333_v41 }
 0x700   : > { %v1340_v46 = vadd.f32 %v1339_v45, %v1333_v41 }
 0x702   : > { %v1341_v47 = vmul.f32 0.7978846, %v1340_v46 }
 0x704   : > { %2025 = vtanh.f32 %v1341_v47 }
 0x70e   : > { %v2026_v48 = vpop.eup %2025 }
 0x70f   : > { %v1343_v50 = vadd.f32 1.0, %v2026_v48 }
 0x711   : > { %v1344_v51 = vmul.f32 %v1343_v50, %v1336_v49 }
 0x713   : > { %1862 = vmatmul.mubr.f32.vlgmr.msra.gmra.mrb[0].mxu1 %v1344_v51 }
 0x7e6   : > { %v1434_v53 = vpop.f32.mrb[0].mxu1 }
 0x7e7   : > { %v1435_v54 = vadd.f32 %v1714_v52, %v1434_v53  ;;  %v1863_v55 = vpop.f32.mrb[1].mxu1 }
 0x7e9   : > { %v1440_v56 = vsel %vm733_vm2, %v1435_v54, 0.0 }
 0x7ea   : > { %1441 = vadd.xlane.f32.xlu1 %v1440_v56 }
 0x877   : > { %v1442_v57 = vpop.xlane.xlu1 %1441 }
 0x878   : > { %v1443_v58 = vmul.f32 0.03125, %v1442_v57 }
 0x87a   : > { %v1444_v59 = vsub.f32 %v1435_v54, %v1443_v58 }
 0x87c   : > { %v1445_v60 = vmul.f32 %v1444_v59, %v1444_v59 }
 0x87e   : > { %v1446_v61 = vsel %vm733_vm2, %v1445_v60, 0.0 }
 0x87f   : > { %1447 = vadd.xlane.f32.xlu1 %v1446_v61 }
 0x90c   : > { %v1448_v62 = vpop.xlane.xlu1 %1447 }
 0x90d   : > { %v1449_v63 = vmul.f32 0.03125, %v1448_v62 }
 0x90f   : > { %v1450_v0 = vadd.f32 1e-06, %v1449_v63 }
 0x911   : > { %2027 = vrsqrt.f32 %v1450_v0 }
 0x91b   : > { %v2028_v1 = vpop.eup %2027 }
 0x91c   : > { %v1452_v3 = vmul.f32 %v2028_v1, %v1444_v59 }
 0x91e   : > { %v1459_v5 = vmul.f32 %v1715_v2, %v1452_v3 }
 0x920   : > { %v1466_v6 = vadd.f32 %v1716_v4, %v1459_v5 }
 0x922   : > { %v1467_v7 = vadd.f32 %v1466_v6, %v2533_v17 }
 0x924   : > { %1468 = vst.msk [vmem:[%s675_s28] sm:$0xff] %vm733_vm2, %v1467_v7 }
 0x925 PF: > { %s2782_s19 = sld [smem:[#allocation15_spill]]  ;;  %s2783_s29 = sld [smem:[#allocation13_spill]] }
 0x926   : > { %s2785_s10 = sld [smem:[#allocation37_spill]]  ;;  %s1488_s20 = sshll.u32 %s675_s28, 4  ;;  %s1489_s20 = int_to_ptr.vmem [resolvable:$true] %s1488_s20 }
 0x927   : > { %s2029_s14 = scalar_lea.vmem %s1489_s20, 128  ;;  %s2188_s23 = smov [#allocation3]  }
 0x928   : > { %p2030_p9 = scmp.ne.s32.totalorder %s1489_s20, %s2029_s14  ;;  %s2033_s30 = sshll.u32 %s2188_s23, 4  ;;  %s2034_s30 = int_to_ptr.vmem [resolvable:$false] %s2033_s30 }
 0x929   : > { %s2035_s22 = scalar_lea.vmem %s2034_s30, 256  ;;  %p2036_p0 = scmp.lt.s32.totalorder %s1489_s20, %s2034_s30 }
 0x92a   : > { %p2031_p10 = pnand %p2030_p9, %p2356_p3  ;;  %p2037_p1 = scmp.lt.s32.totalorder %s2035_s22, %s2029_s14 }
 0x92b   : > { %s1719_s12 = sshll.u32 %s2782_s19, 7  ;;  %s2786_s25 = sand.u32 1, %s2783_s29  }
 0x92c   : > { %s2601_s13 = scalar_lea.hbm %s2785_s10, %s1719_s12  ;;  %s1470_s16 = scalar_lea.sflag [#allocation4], %s2786_s25 }
 0x92d   : > { %p2032_p11 = pneg %p2031_p10  ;;  %p2038_p4 = por %p2037_p1, %p2036_p0 }
 0x92f   : > { %p2039_p2 = pnand %p2038_p4, %p2032_p11 }
 0x931   : > { %2042 = shalt.err (!%p2039_p2)
}
 0x932   : > { %s2043_s17 = scalar_lea.hbm %s2601_s13, 128  ;;  %s2047_s15 = scalar_lea.hbm %s2785_s10, 256 }
 0x933   : > { %p2044_p5 = scmp.ne.s32.totalorder %s2601_s13, %s2043_s17  ;;  %p2048_p9 = scmp.lt.u32.totalorder %s2601_s13, %s2785_s10 }
 0x934   : > { %p2049_p10 = scmp.lt.u32.totalorder %s2047_s15, %s2043_s17  ;;  %p2051_p0 = scmp.lt.u32.totalorder %s2043_s17, %s2601_s13 }
 0x935   : > { %p2045_p6 = pnand %p2044_p5, %p2356_p3 }
 0x936   : > { %p2050_p11 = por %p2049_p10, %p2048_p9 }
 0x937   : > { %p2046_p8 = pneg %p2045_p6 }
 0x938   : > { %p2052_p1 = por %p2051_p0, %p2050_p11 }
 0x93a   : > { %p2053_p4 = pnand %p2052_p1, %p2046_p8 }
 0x93c   : > { %2056 = shalt.err (!%p2053_p4)
}
 0x93d   : > { %s2787_s12 = sld [smem:[#allocation10_spill]]  ;;  %s1720_s2 = sshll.u32 %s2782_s19, 2 }
 0x93e   : > { %1912 = dma.vmem_to_hbm [thread:$0]  (%p2356_p3), %s1489_s20, 128, %s2601_s13, %s1470_s16  }
 0x93f   : > { %s1503_s25 = sshll.u32 %s682_s0, 4  ;;  %s1499_s14 = sadd.s32 %s2163_s1, %s1720_s2  ;;  %s2628_s25 = int_to_ptr.vmem [resolvable:$true] %s1503_s25 }
 0x940   : > { %s1721_s23 = sshll.u32 %s1499_s14, 7  ;;  %s2789_s21 = sld [smem:[#allocation38_spill]] }
 0x941   : > { %s2057_s24 = scalar_lea.vmem %s2628_s25, 128  ;;  %s2189_s18 = smov [#allocation5]  }
 0x942   : > { %p2058_p2 = scmp.ne.s32.totalorder %s2628_s25, %s2057_s24  ;;  %s2061_s0 = sshll.u32 %s2189_s18, 4  ;;  %s2062_s0 = int_to_ptr.vmem [resolvable:$false] %s2061_s0 }
 0x943   : > { %s2791_s26 = sand.u32 1, %s2787_s12   ;;  %s2063_s1 = scalar_lea.vmem %s2062_s0, 256 }
 0x944   : > { %s1475_s15 = scalar_lea.sflag [#allocation6], %s2791_s26  ;;  %p2059_p3 = pnand %p2058_p2, %p2385_p12 }
 0x945   : > { %p2064_p6 = scmp.lt.s32.totalorder %s2628_s25, %s2062_s0  ;;  %p2065_p8 = scmp.lt.s32.totalorder %s2063_s1, %s2057_s24 }
 0x946   : > { %s2790_s17 = smov %s2789_s21  ;;  %s1501_s28 = scalar_lea.hbm %s2789_s21, %s1721_s23 }
 0x947   : > { %p2060_p5 = pneg %p2059_p3  ;;  %p2066_p9 = por %p2065_p8, %p2064_p6 }
 0x949   : > { %p2067_p10 = pnand %p2066_p9, %p2060_p5 }
 0x94b   : > { %2070 = shalt.err (!%p2067_p10)
}
 0x94c   : > { %s2071_s19 = scalar_lea.hbm %s1501_s28, 128  ;;  %s2075_s16 = scalar_lea.hbm %s2790_s17, 1024 }
 0x94d   : > { %p2072_p11 = scmp.ne.s32.totalorder %s1501_s28, %s2071_s19  ;;  %p2076_p4 = scmp.lt.u32.totalorder %s1501_s28, %s2790_s17 }
 0x94e   : > { %p2077_p2 = scmp.lt.u32.totalorder %s2075_s16, %s2071_s19  ;;  %p2079_p13 = scmp.lt.u32.totalorder %s2071_s19, %s1501_s28 }
 0x94f   : > { %p2073_p0 = pnand %p2072_p11, %p2385_p12 }
 0x950   : > { %p2078_p3 = por %p2077_p2, %p2076_p4 }
 0x951   : > { %p2074_p1 = pneg %p2073_p0 }
 0x952   : > { %p2080_p6 = por %p2079_p13, %p2078_p3 }
 0x954   : > { %p2081_p5 = pnand %p2080_p6, %p2074_p1 }
 0x956   : > { %2084 = shalt.err (!%p2081_p5)
}
 0x957   : > { %1913 = dma.vmem_to_hbm [thread:$0]  (%p2385_p12), %s2628_s25, 128, %s1501_s28, %s1475_s15  }
 0x958 PF: > { %s2792_s2 = sld [smem:[#allocation18_spill]]  ;;  %s2793_s14 = sld [smem:[#allocation12_spill]] }
 0x95e   : > { %p1923_p8 = scmp.ge.s32.totalorder %s2792_s2, 2  ;;  %s1515_s30 = sand.u32 1, %s2793_s14  }
 0x95f   : > { %s1516_s22 = scalar_lea.sflag [#allocation4], %s1515_s30 }
 0x960   : > { %p1917_p9 = pnand %p1923_p8, %p2373_p7 }
 0x962   : > { %2130 = dma.done.wait (!%p1917_p9), %s1516_s22, 128  }
 0x963   : > { %2132 = vsyncadd (!%p1917_p9), %s1516_s22, 4294967168  ;;  %s2795_s21 = sld [smem:[#allocation9_spill]]  ;;  %s2796_s26 = sld [smem:[#allocation26_spill]] }
 0x969   : > { %s1524_s24 = sand.u32 1, %s2795_s21   ;;  %p2797_p13 = scmp.ne.s32.totalorder %s2796_s26, 0 }
 0x96a   : > { %s1525_s18 = scalar_lea.sflag [#allocation6], %s1524_s24 }
 0x96b   : > { %p1920_p10 = pnand %p1923_p8, %p2797_p13 }
 0x96d   : > { %2134 = dma.done.wait (!%p1920_p10), %s1525_s18, 128  }
 0x96e   : > { %2136 = vsyncadd (!%p1920_p10), %s1525_s18, 4294967168  ;;  %s35_s2 = sadd.s32 1, %s2792_s2   ;;  %s2798_s27 = sld [smem:[#allocation10_spill]] }
 0x96f   : > { %p32_p12 = scmp.ge.s32.totalorder %s35_s2, 10   ;;  %s2799_s28 = sld [smem:[#allocation11_spill]] }
 0x970   : > { %s2800_s29 = sld [smem:[#allocation25_spill]]  ;;  %s2801_s30 = sld [smem:[#allocation13_spill]] }
 0x971   : > { %s2802_s0 = sld [smem:[#allocation14_spill]]  ;;  %s2803_s19 = sld [smem:[#allocation24_spill]] }
 0x972   : > { %s2804_s1 = sld [smem:[#allocation16_spill]]  ;;  %s2805_s20 = sld [smem:[#allocation17_spill]] }
 0x973   : > { %s2806_s21 = sld [smem:[#allocation19_spill]]  ;;  %s2807_s22 = sld [smem:[#allocation21_spill]] }
 0x974   :  { %34 = sbr.rel (!%p32_p12) target bundleno = 22 (0x16), region = 169 }
 0x97b   :  { %1530 = vsyncpa [#allocation4], 1 }
 0x97c   :  { %1532 = vsyncpa [#allocation4 + $0x1], 1 }
 0x97d   :  { %1533 = vsyncpa [#allocation6], 1 }
 0x97e   :  { %1535 = vsyncpa [#allocation6 + $0x1], 1 }

</bundles_post_ra>
